<compile_context>
chip_gen: v6e
topology: v6e:2x2x1
jax: 0.10.0
libtpu: 0.0.40
codegen_flags: <defaults>
</compile_context>

<pallas_src>
import jax
import jax.numpy as jnp
from jax.experimental import pallas as pl
from jax.experimental.pallas import tpu as pltpu

_TARGET_BLOCK_BYTES = 8 * 1024 * 1024   # ~8 MiB per block (per buffer)
_VMEM_LIMIT_BYTES = 48 * 1024 * 1024    # safe on v5e/v6e/v7x


def _residual_add_kernel(x_ref, o_ref):
    # blocks(x) and shortcut(x) are both Identity, so out = x + x.
    x = x_ref[...]
    o_ref[...] = x + x


def _pick_lanes(total):
    """Largest lane-dense width (multiple of 128) that divides the element count."""
    for lanes in (1024, 512, 256, 128):
        if total % lanes == 0:
            return lanes
    return None


def _fallback_pallas(x):
    """Lane-sparse fallback for element counts not divisible by 128.

    Only hit for unusual shapes; keeps the kernel correct without any pad/copy.
    """
    if x.ndim >= 3 and x.shape[0] > 1:
        block = (1,) + tuple(x.shape[1:])
        zeros = (0,) * (x.ndim - 1)
        return pl.pallas_call(
            _residual_add_kernel,
            out_shape=jax.ShapeDtypeStruct(x.shape, x.dtype),
            grid=(x.shape[0],),
            in_specs=[pl.BlockSpec(block, lambda i: (i,) + zeros)],
            out_specs=pl.BlockSpec(block, lambda i: (i,) + zeros),
            compiler_params=pltpu.CompilerParams(
                dimension_semantics=("parallel",),
                vmem_limit_bytes=_VMEM_LIMIT_BYTES,
            ),
        )(x)
    # Tiny / low-rank case: single full-array block.
    return pl.pallas_call(
        _residual_add_kernel,
        out_shape=jax.ShapeDtypeStruct(x.shape, x.dtype),
    )(x)


def residual_block_forward(x, in_channels, out_channels):
    """Pallas implementation of ResidualBlock.forward (Identity blocks/shortcut).

    `in_channels` / `out_channels` only pick between two Identity paths in the
    reference module, so the result is x + x either way (kept to mirror the
    module signature).
    """
    del in_channels, out_channels  # dead parameters by construction
    orig_shape = x.shape
    total = 1
    for d in orig_shape:
        total *= int(d)

    lanes = _pick_lanes(total)
    if lanes is None:
        return _fallback_pallas(x)

    rows = total // lanes
    itemsize = jnp.dtype(x.dtype).itemsize

    # Row tile targeting ~8 MiB blocks; multiple of 8 (sublane) or == rows.
    row_tile = max(8, (_TARGET_BLOCK_BYTES // (lanes * itemsize)) // 8 * 8)
    row_tile = min(row_tile, rows)
    if row_tile == rows and rows >= 16:
        # Ensure >= 2 grid steps so both v7x TensorCores get work.
        half = (rows // 2) // 8 * 8
        if half >= 8:
            row_tile = half

    grid = (pl.cdiv(rows, row_tile),)
    x2d = x.reshape(rows, lanes)   # free: metadata-only reshape of contiguous data

    out2d = pl.pallas_call(
        _residual_add_kernel,
        out_shape=jax.ShapeDtypeStruct((rows, lanes), x.dtype),
        grid=grid,
        in_specs=[pl.BlockSpec((row_tile, lanes), lambda i: (i, 0))],
        out_specs=pl.BlockSpec((row_tile, lanes), lambda i: (i, 0)),
        compiler_params=pltpu.CompilerParams(
            dimension_semantics=("parallel",),
            vmem_limit_bytes=_VMEM_LIMIT_BYTES,
        ),
    )(x2d)

    return out2d.reshape(orig_shape)


if __name__ == "__main__":
    key = jax.random.PRNGKey(0)

    # Module-consistent small shape: batch=2, channels=4, spatial=16.
    N, C, H, W = 2, 4, 16, 16
    x = jax.random.normal(key, (N, C, H, W), dtype=jnp.float32)

    out = residual_block_forward(x, in_channels=C, out_channels=C)
    out = jax.block_until_ready(out)

    ref = x + x  # Identity blocks + Identity shortcut
    assert out.shape == x.shape and out.dtype == x.dtype
    assert jnp.allclose(out, ref, atol=0.0, rtol=0.0)

    # Exercise the multi-block (grid >= 2) path as well, still small.
    x2 = jax.random.normal(jax.random.PRNGKey(1), (2, 4, 64, 64), dtype=jnp.float32)
    out2 = jax.block_until_ready(residual_block_forward(x2, 4, 4))
    assert jnp.allclose(out2, x2 + x2, atol=0.0, rtol=0.0)

    print("KERNEL_OK")
</pallas_src>

<mosaic_0001>
module attributes {stable_mosaic.version = 11 : i64} {
  func.func @_residual_add_kernel(%arg0: i32, %arg1: memref<2x1024xf32, #tpu.memory_space<vmem>>, %arg2: memref<2x1024xf32, #tpu.memory_space<vmem>>) attributes {dimension_semantics = [#tpu.dimension_semantics<parallel>], iteration_bounds = array<i64: 1>, scalar_prefetch = 0 : i64, scratch_operands = 0 : i64, tpu.core_type = #tpu.core_type<tc>, window_params = [{transform_indices = @transform_0, window_bounds = array<i64: 2, 1024>}, {transform_indices = @transform_1, window_bounds = array<i64: 2, 1024>}]} {
    %c0 = arith.constant 0 : index
    %c0_0 = arith.constant 0 : index
    %0 = vector.load %arg1[%c0, %c0_0] : memref<2x1024xf32, #tpu.memory_space<vmem>>, vector<2x1024xf32>
    %1 = arith.addf %0, %0 : vector<2x1024xf32>
    %c0_1 = arith.constant 0 : index
    %c0_2 = arith.constant 0 : index
    %2 = vector.load %arg2[%c0_1, %c0_2] : memref<2x1024xf32, #tpu.memory_space<vmem>>, vector<2x1024xf32>
    tpu.vector_store %arg2[%c0_1, %c0_2], %1 {strides = array<i32>} : memref<2x1024xf32, #tpu.memory_space<vmem>>, vector<2x1024xf32>,
    return
  }
  func.func @transform_0(%arg0: i32) -> (i32, i32) {
    %c0_i32 = arith.constant 0 : i32
    %c0_i32_0 = arith.constant 0 : i32
    return %arg0, %c0_i32 : i32, i32
  }
  func.func @transform_1(%arg0: i32) -> (i32, i32) {
    %c0_i32 = arith.constant 0 : i32
    %c0_i32_0 = arith.constant 0 : i32
    return %arg0, %c0_i32 : i32, i32
  }
}

</mosaic_0001>

<bundles_post_ra>
// kernel: tpu_custom_call.1
= control target key start
LH: loop header
LB: loop body
LE: loop exit
PB: predicated region body
PF: predicated region fallthrough
CT: control target
= control target key end

     0   :  { %6 = vsyncpa [#allocation3], 0  ;;  %s106_s0 = inlined_call_operand.hbm [shape: f32[2,1024], index: 0, kind: input, shape index: {}]   ;;  %s107_s1 = inlined_call_operand.hbm [shape: f32[2,1024], index: 1, kind: output, shape index: {}]  }
   0x1   :  { %7 = vsyncpa [#allocation4], 0  ;;  %s88_s6 = smov [#allocation2]  }
   0x2   :  { %s14_s7 = sshll.u32 %s88_s6, 4  ;;  %s15_s7 = int_to_ptr.vmem [resolvable:$true] %s14_s7 }
   0x3   :  { %s52_s8 = scalar_lea.vmem %s15_s7, 256  ;;  %p57_p1 = scmp.lt.s32.totalorder %s15_s7, %s15_s7 }
   0x4   :  { %p53_p0 = scmp.ne.s32.totalorder %s15_s7, %s52_s8  ;;  %p58_p2 = scmp.lt.s32.totalorder %s52_s8, %s52_s8 }
   0x6   :  { %p59_p3 = por %p58_p2, %p57_p1 }
   0x8   :  { %p60_p4 = pnand %p59_p3, %p53_p0 }
   0xa   :  { %63 = shalt.err (!%p60_p4)
}
   0xb   :  { %17 = dma.hbm_to_vmem [thread:$0]  %s106_s0, 256, %s15_s7, [#allocation3]  }
   0xc   :  { %84 = dma.done.wait [#allocation3], 256  }
   0xd   :  { %85 = vsyncadd [#allocation3], 4294967040  ;;  %s89_s11 = smov [#allocation5]   ;;  %v21_v0 = vld [vmem:[#allocation2] sm:$0xff]  ;;  %v22_v1 = vld [vmem:[#allocation2 + $0x8] sm:$0xff] }
   0xe   :  { %s33_s12 = sshll.u32 %s89_s11, 4  ;;  %v23_v2 = vadd.f32 %v21_v0, %v21_v0  ;;  %v24_v3 = vadd.f32 %v22_v1, %v22_v1  ;;  %s34_s12 = int_to_ptr.vmem [resolvable:$true] %s33_s12 }
   0xf   :  { %s64_s13 = scalar_lea.vmem %s34_s12, 256  ;;  %p69_p6 = scmp.lt.s32.totalorder %s34_s12, %s34_s12 }
  0x10   :  { %25 = vst [vmem:[#allocation5] sm:$0xff] %v23_v2  ;;  %26 = vst [vmem:[#allocation5 + $0x8] sm:$0xff] %v24_v3  ;;  %p65_p5 = scmp.ne.s32.totalorder %s34_s12, %s64_s13  ;;  %p70_p7 = scmp.lt.s32.totalorder %s64_s13, %s64_s13 }
  0x12   :  { %p71_p8 = por %p70_p7, %p69_p6 }
  0x14   :  { %p72_p9 = pnand %p71_p8, %p65_p5 }
  0x16   :  { %75 = shalt.err (!%p72_p9)
}
  0x17   :  { %36 = dma.vmem_to_hbm [thread:$0]  %s34_s12, 256, %s107_s1, [#allocation4]  }
  0x18   :  { %86 = dma.done.wait [#allocation4], 256  }
  0x19   :  { %87 = vsyncadd [#allocation4], 4294967040 }
  0x1a   :  { %40 = vsyncpa [#allocation3], 1 }
  0x1b   :  { %41 = vsyncpa [#allocation4], 1 }

</bundles_post_ra>
